<compile_context>
chip_gen: v5e
topology: v5e:2x2
jax: 0.10.0
libtpu: 0.0.40
codegen_flags: <defaults>
</compile_context>

<pallas_src>
import jax
import jax.numpy as jnp
from jax.experimental import pallas as pl
from jax.experimental.pallas import tpu as pltpu


def _round_up(x, m):
    return ((x + m - 1) // m) * m


def _choose_tile(dim, align, max_tile, min_tile):
    """Pick (tile, padded_dim).  Single tile if dim <= max_tile; otherwise the
    power-of-two tile in [min_tile, max_tile] with the least padding (ties go
    to the larger tile because we scan largest-first)."""
    if dim <= max_tile:
        t = _round_up(dim, align)
        return t, t
    best_t, best_p = None, None
    cand = max_tile
    while cand >= min_tile:
        padded = _round_up(dim, cand)
        if best_p is None or padded < best_p:
            best_t, best_p = cand, padded
        cand //= 2
    return best_t, best_p


def _fc_relu_kernel(x_ref, w_ref, b_ref, o_ref, acc_ref):
    # x_ref: (tm, tk)  w_ref: (tk, tn)  b_ref: (1, tn) f32  o_ref: (tm, tn)
    k = pl.program_id(2)

    @pl.when(k == 0)
    def _():
        acc_ref[...] = jnp.zeros_like(acc_ref)

    acc_ref[...] += jnp.dot(
        x_ref[...], w_ref[...], preferred_element_type=jnp.float32
    )

    @pl.when(k == pl.num_programs(2) - 1)
    def _():
        y = acc_ref[...] + b_ref[...]                 # bias add in f32
        o_ref[...] = jnp.maximum(y, 0.0).astype(o_ref.dtype)   # ReLU + cast


def prepare_fc_weights(w, b, *, compute_dtype=jnp.bfloat16,
                       max_tn=512, max_tk=2048):
    """Pad + cast the Linear parameters once (hoisted out of the hot path).

    w: (in_features, out_features), b: (out_features,).
    Returns (w_padded[(Kp,Np), compute_dtype], b_padded[(1,Np), f32], tn, tk).
    """
    K, N = w.shape
    assert b.shape == (N,)
    tk, Kp = _choose_tile(K, 128, max_tk, min_tile=256)
    tn, Np = _choose_tile(N, 128, max_tn, min_tile=128)
    wp = w if (Kp, Np) == (K, N) else jnp.pad(w, ((0, Kp - K), (0, Np - N)))
    wp = wp.astype(compute_dtype)
    bp = b if Np == N else jnp.pad(b, (0, Np - N))
    bp = bp.astype(jnp.float32).reshape(1, Np)
    return wp, bp, tn, tk


def fc_module_forward(x, w_padded, b_padded, *, tn, tk,
                      out_features=None, out_dtype=None):
    """y[:M, :out_features] = relu(x @ W + b); dropout = identity (eval)."""
    M, K = x.shape
    Kp, Np = w_padded.shape
    assert K <= Kp and b_padded.shape == (1, Np)
    assert Np % tn == 0 and Kp % tk == 0
    if out_features is None:
        out_features = Np
    if out_dtype is None:
        out_dtype = x.dtype
    compute_dtype = w_padded.dtype

    # Dtype-aware sublane rounding: 8 (f32), 16 (bf16), 32 (int8/fp8).
    sublane = max(8, 32 // jnp.dtype(compute_dtype).itemsize)
    if M <= 512:
        tm = _round_up(M, sublane)            # single M tile, minimal padding
        Mp = tm
    else:
        tm, Mp = _choose_tile(M, sublane, 256, min_tile=128)

    # v7x occupancy: avoid a 1x1 parallel grid on compute-heavy problems so
    # both TensorCores get work; skip for small/mem-bound shapes.
    if Mp // tm == 1 and Np // tn == 1 and Mp * Np * Kp >= (1 << 27):
        if Np >= 256 and (Np // 128) % 2 == 0:
            tn = Np // 2
        elif Mp >= 2 * sublane and (Mp // sublane) % 2 == 0:
            tm = Mp // 2

    xp = x
    if (Mp, Kp) != (M, K):
        xp = jnp.pad(x, ((0, Mp - M), (0, Kp - K)))
    xp = xp.astype(compute_dtype)

    gm, gn, gk = Mp // tm, Np // tn, Kp // tk
    grid = (gm, gn, gk)

    c_item = jnp.dtype(compute_dtype).itemsize
    o_item = jnp.dtype(out_dtype).itemsize
    cost = pl.CostEstimate(
        flops=2 * Mp * Kp * Np,
        transcendentals=0,
        bytes_accessed=(gn * Mp * Kp * c_item      # x re-read per N tile
                        + gm * Kp * Np * c_item    # W re-read per M tile
                        + gm * Np * 4              # bias
                        + Mp * Np * o_item),       # output
    )

    # Double-buffered input/output tiles + resident f32 accumulator.
    vmem_bytes = (2 * (tm * tk + tk * tn) * c_item
                  + 2 * tn * 4
                  + 2 * tm * tn * o_item
                  + tm * tn * 4)
    vmem_limit = int(min(48 * 2**20, max(2 * vmem_bytes, 32 * 2**20)))

    out = pl.pallas_call(
        _fc_relu_kernel,
        out_shape=jax.ShapeDtypeStruct((Mp, Np), out_dtype),
        grid_spec=pltpu.PrefetchScalarGridSpec(
            num_scalar_prefetch=0,
            grid=grid,
            in_specs=[
                pl.BlockSpec((tm, tk), lambda i, j, k: (i, k)),   # x tile
                pl.BlockSpec((tk, tn), lambda i, j, k: (k, j)),   # W tile
                pl.BlockSpec((1, tn), lambda i, j, k: (0, j)),    # bias tile
            ],
            out_specs=pl.BlockSpec((tm, tn), lambda i, j, k: (i, j)),
            scratch_shapes=[pltpu.VMEM((tm, tn), jnp.float32)],
        ),
        compiler_params=pltpu.CompilerParams(
            dimension_semantics=("parallel", "parallel", "arbitrary"),
            vmem_limit_bytes=vmem_limit,
        ),
        cost_estimate=cost,
    )(xp, w_padded, b_padded)

    if (Mp, Np) != (M, out_features):
        out = out[:M, :out_features]
    return out


if __name__ == "__main__":
    # Shapes consistent with FcModule usage (small FC head).
    batch = 16
    in_features = 32
    out_features = 64
    dropout_p = 0.5  # nn.Dropout is identity at inference; unused here

    key = jax.random.PRNGKey(0)
    kx, kw, kb = jax.random.split(key, 3)

    # nn.Linear default init: U(-1/sqrt(in), 1/sqrt(in)); weight stored
    # transposed as (in, out) for the kernel.
    bound = 1.0 / (in_features ** 0.5)
    w = jax.random.uniform(kw, (in_features, out_features), jnp.float32,
                           minval=-bound, maxval=bound)
    b = jax.random.uniform(kb, (out_features,), jnp.float32,
                           minval=-bound, maxval=bound)
    x = jax.random.normal(kx, (batch, in_features), jnp.float32)

    # Weight padding + bf16 cast hoisted out of the per-call hot path.
    wp, bp, tn, tk = prepare_fc_weights(w, b)

    fwd = jax.jit(fc_module_forward,
                  static_argnames=("tn", "tk", "out_features", "out_dtype"))
    y = jax.block_until_ready(
        fwd(x, wp, bp, tn=tn, tk=tk, out_features=out_features))
    assert y.shape == (batch, out_features)

    # Reference along the same bf16-compute / f32-accumulate path.
    def ref(xr, wr, br):
        acc = jnp.dot(xr.astype(jnp.bfloat16), wr.astype(jnp.bfloat16),
                      preferred_element_type=jnp.float32)
        return jnp.maximum(acc + br, 0.0)

    assert jnp.allclose(y, ref(x, w, b), atol=2e-2, rtol=2e-2)
    # Coarse check against full-f32 math (bf16 rounding noise only).
    assert jnp.allclose(y, jnp.maximum(x @ w + b, 0.0), atol=1e-1, rtol=5e-2)

    # Ragged / larger shape: exercises padding-aware tiling
    # (M=300 -> single 304-row tile; K=200 -> 256; N=96 -> 128).
    M2, K2, N2 = 300, 200, 96
    k1, k2, k3 = jax.random.split(jax.random.PRNGKey(1), 3)
    x2 = jax.random.normal(k1, (M2, K2), jnp.float32)
    w2 = jax.random.normal(k2, (K2, N2), jnp.float32) * 0.05
    b2 = jax.random.normal(k3, (N2,), jnp.float32) * 0.05
    wp2, bp2, tn2, tk2 = prepare_fc_weights(w2, b2)
    y2 = jax.block_until_ready(
        fwd(x2, wp2, bp2, tn=tn2, tk=tk2, out_features=N2))
    assert y2.shape == (M2, N2)
    assert jnp.allclose(y2, ref(x2, w2, b2), atol=2e-2, rtol=2e-2)

    print("KERNEL_OK")
</pallas_src>

<mosaic_0001>
module attributes {stable_mosaic.version = 11 : i64} {
  func.func @_fc_relu_kernel(%arg0: i32, %arg1: i32, %arg2: i32, %arg3: memref<16x128xbf16, #tpu.memory_space<vmem>>, %arg4: memref<128x128xbf16, #tpu.memory_space<vmem>>, %arg5: memref<1x128xf32, #tpu.memory_space<vmem>>, %arg6: memref<16x128xf32, #tpu.memory_space<vmem>>, %arg7: memref<16x128xf32, #tpu.memory_space<vmem>>) attributes {dimension_semantics = [#tpu.dimension_semantics<parallel>, #tpu.dimension_semantics<parallel>, #tpu.dimension_semantics<arbitrary>], iteration_bounds = array<i64: 1, 1, 1>, scalar_prefetch = 0 : i64, scratch_operands = 1 : i64, tpu.core_type = #tpu.core_type<tc>, window_params = [{transform_indices = @transform_0, window_bounds = array<i64: 16, 128>}, {transform_indices = @transform_1, window_bounds = array<i64: 128, 128>}, {transform_indices = @transform_2, window_bounds = array<i64: 1, 128>}, {transform_indices = @transform_3, window_bounds = array<i64: 16, 128>}]} {
    %c0_i32 = arith.constant 0 : i32
    %0 = arith.cmpi eq, %arg2, %c0_i32 : i32
    %1 = arith.extui %0 : i1 to i32
    %c0_i32_0 = arith.constant 0 : i32
    %2 = arith.cmpi ne, %1, %c0_i32_0 : i32
    scf.if %2 {
      %cst_10 = arith.constant 0.000000e+00 : f32
      %12 = vector.broadcast %cst_10 : f32 to vector<16x128xf32>
      %c0_11 = arith.constant 0 : index
      %c0_12 = arith.constant 0 : index
      %13 = vector.load %arg7[%c0_11, %c0_12] : memref<16x128xf32, #tpu.memory_space<vmem>>, vector<16x128xf32>
      tpu.vector_store %arg7[%c0_11, %c0_12], %12 {strides = array<i32>} : memref<16x128xf32, #tpu.memory_space<vmem>>, vector<16x128xf32>,
    } else {
    }
    %c0 = arith.constant 0 : index
    %c0_1 = arith.constant 0 : index
    %3 = vector.load %arg7[%c0, %c0_1] : memref<16x128xf32, #tpu.memory_space<vmem>>, vector<16x128xf32>
    %c0_2 = arith.constant 0 : index
    %c0_3 = arith.constant 0 : index
    %4 = vector.load %arg3[%c0_2, %c0_3] : memref<16x128xbf16, #tpu.memory_space<vmem>>, vector<16x128xbf16>
    %c0_4 = arith.constant 0 : index
    %c0_5 = arith.constant 0 : index
    %5 = vector.load %arg4[%c0_4, %c0_5] : memref<128x128xbf16, #tpu.memory_space<vmem>>, vector<128x128xbf16>
    %cst = arith.constant dense<0.000000e+00> : vector<16x128xf32>
    %6 = tpu.matmul %4, %5, %cst {dimension_numbers = #tpu.dot_dimension_numbers<[1], [0], [0], [1], [0, 0, 1, 1], [], []>} : vector<16x128xbf16>, vector<128x128xbf16>, vector<16x128xf32> -> vector<16x128xf32>
    %7 = arith.addf %3, %6 : vector<16x128xf32>
    %c0_6 = arith.constant 0 : index
    %c0_7 = arith.constant 0 : index
    %8 = vector.load %arg7[%c0_6, %c0_7] : memref<16x128xf32, #tpu.memory_space<vmem>>, vector<16x128xf32>
    tpu.vector_store %arg7[%c0_6, %c0_7], %7 {strides = array<i32>} : memref<16x128xf32, #tpu.memory_space<vmem>>, vector<16x128xf32>,
    %c0_i32_8 = arith.constant 0 : i32
    %9 = arith.cmpi eq, %arg2, %c0_i32_8 : i32
    %10 = arith.extui %9 : i1 to i32
    %c0_i32_9 = arith.constant 0 : i32
    %11 = arith.cmpi ne, %10, %c0_i32_9 : i32
    scf.if %11 {
      %c0_10 = arith.constant 0 : index
      %c0_11 = arith.constant 0 : index
      %12 = vector.load %arg7[%c0_10, %c0_11] : memref<16x128xf32, #tpu.memory_space<vmem>>, vector<16x128xf32>
      %c0_12 = arith.constant 0 : index
      %c0_13 = arith.constant 0 : index
      %13 = vector.load %arg5[%c0_12, %c0_13] : memref<1x128xf32, #tpu.memory_space<vmem>>, vector<1x128xf32>
      %14 = vector.broadcast %13 : vector<1x128xf32> to vector<16x128xf32>
      %15 = arith.addf %12, %14 : vector<16x128xf32>
      %cst_14 = arith.constant 0.000000e+00 : f32
      %16 = vector.broadcast %cst_14 : f32 to vector<16x128xf32>
      %17 = arith.maximumf %15, %16 : vector<16x128xf32>
      %c0_15 = arith.constant 0 : index
      %c0_16 = arith.constant 0 : index
      %18 = vector.load %arg6[%c0_15, %c0_16] : memref<16x128xf32, #tpu.memory_space<vmem>>, vector<16x128xf32>
      tpu.vector_store %arg6[%c0_15, %c0_16], %17 {strides = array<i32>} : memref<16x128xf32, #tpu.memory_space<vmem>>, vector<16x128xf32>,
    } else {
    }
    return
  }
  func.func @transform_0(%arg0: i32, %arg1: i32, %arg2: i32) -> (i32, i32) {
    %c0_i32 = arith.constant 0 : i32
    return %arg0, %arg2 : i32, i32
  }
  func.func @transform_1(%arg0: i32, %arg1: i32, %arg2: i32) -> (i32, i32) {
    %c0_i32 = arith.constant 0 : i32
    return %arg2, %arg1 : i32, i32
  }
  func.func @transform_2(%arg0: i32, %arg1: i32, %arg2: i32) -> (i32, i32) {
    %c0_i32 = arith.constant 0 : i32
    %c0_i32_0 = arith.constant 0 : i32
    return %c0_i32, %arg1 : i32, i32
  }
  func.func @transform_3(%arg0: i32, %arg1: i32, %arg2: i32) -> (i32, i32) {
    %c0_i32 = arith.constant 0 : i32
    return %arg0, %arg1 : i32, i32
  }
}

</mosaic_0001>

<bundles_post_ra>
// kernel: fc_module_forward.1
= control target key start
LH: loop header
LB: loop body
LE: loop exit
PB: predicated region body
PF: predicated region fallthrough
CT: control target
= control target key end

     0   :  { %8 = vsyncpa [#allocation4], 0  ;;  %s305_s0 = inlined_call_operand.vmem [shape: bf16[16,128], index: 0, kind: input, shape index: {}]   ;;  %s306_s1 = inlined_call_operand.hbm [shape: bf16[128,128], index: 1, kind: input, shape index: {}]   ;;  %s307_s2 = inlined_call_operand.vmem [shape: f32[1,128], index: 2, kind: input, shape index: {}]   ;;  %s308_s3 = inlined_call_operand.hbm [shape: f32[16,128], index: 3, kind: output, shape index: {}]  }
   0x1   :  { %9 = vsyncpa [#allocation5], 0  ;;  %s16_s14 = sshll.u32 %s306_s1, 4  ;;  %s267_s15 = smov [#allocation3]   ;;  %s17_s14 = int_to_ptr.hbm [resolvable:$true] %s16_s14 }
   0x2   :  { %s18_s16 = sshll.u32 %s267_s15, 4  ;;  %s268_s17 = smov 64   ;;  %s19_s16 = int_to_ptr.vmem [resolvable:$true] %s18_s16 }
   0x3   :  { %s269_s18 = smov 4  }
   0x4   :  { %24 = dma.hbm_to_vmem [thread:$0]  %s17_s14, 1024, %s19_s16, [#allocation4], %s268_s17, %s268_s17, %s269_s18  }
   0x5   :  { %263 = dma.done.wait [#allocation4], 1024  }
   0x6   :  { %264 = vsyncadd [#allocation4], 4294966272  ;;  %v207_v0 = vld [vmem:[#allocation3 + $0x38] sm:$0xff]  ;;  %v206_v1 = vld [vmem:[#allocation3 + $0x30] sm:$0xff]  ;;  %s270_s22 = smov [#allocation6]   ;;  %s150_s26 = sshll.u32 %s308_s3, 4  ;;  %s151_s26 = int_to_ptr.hbm [resolvable:$true] %s150_s26 }
   0x7   :  { %111 = vmatpush.bf16.msra.mxu0 %v207_v0  ;;  %v205_v2 = vld [vmem:[#allocation3 + $0x28] sm:$0xff]  ;;  %v204_v3 = vld [vmem:[#allocation3 + $0x20] sm:$0xff]  ;;  %v203_v4 = vld [vmem:[#allocation3 + $0x18] sm:$0xff]  ;;  %s148_s23 = sshll.u32 %s270_s22, 4  ;;  %s272_s27 = smov 8   ;;  %s149_s23 = int_to_ptr.vmem [resolvable:$true] %s148_s23 }
   0x8   :  { %v202_v5 = vld [vmem:[#allocation3 + $0x10] sm:$0xff]  ;;  %v201_v6 = vld [vmem:[#allocation3 + $0x8] sm:$0xff]  ;;  %v200_v7 = vld [vmem:[#allocation3] sm:$0xff] }
   0x9   :  { %v199_v8 = vld [vmem:[%s305_s0] sm:$0xff]  ;;  %s271_s0 = smov 128  }
   0xa   :  { %v214_v9 = vld [vmem:[%s307_s2] ss:$0 sm:$0xff] }
   0xb   :  { %112 = vmatpush.bf16.msra.mxu0 %v206_v1 }
   0xf   :  { %113 = vmatpush.bf16.msra.mxu0 %v205_v2 }
  0x13   :  { %114 = vmatpush.bf16.msra.mxu0 %v204_v3 }
  0x17   :  { %115 = vmatpush.bf16.msra.mxu0 %v203_v4 }
  0x1b   :  { %116 = vmatpush.bf16.msra.mxu0 %v202_v5 }
  0x1f   :  { %117 = vmatpush.bf16.msra.mxu0 %v201_v6 }
  0x23   :  { %118 = vmatpush.bf16.msra.mxu0 %v200_v7 }
  0x26   :  { %119 = vmatmul.bf16.vlgmr.msra.gmra.mxu0 %v199_v8 }
  0xa3   :  { %v120_v10 = vpop.f32.mrf.mxu0 }
  0xa4   :  { %v138_v11 = vadd.f32 %v214_v9, %v120_v10 }
  0xa6   :  { %v140_v12 = vmax.f32 %v138_v11, 0.0 }
  0xa8   :  { %142 = vst [vmem:[#allocation6] sm:$0xff] %v140_v12 }
  0xab   :  { %v122_v13 = vpop.f32.mrf.mxu0 }
  0xac   :  { %v139_v14 = vadd.f32 %v214_v9, %v122_v13 }
  0xae   :  { %v141_v15 = vmax.f32 %v139_v14, 0.0 }
  0xb0   :  { %143 = vst [vmem:[#allocation6 + $0x8] sm:$0xff] %v141_v15 }
  0xb1   :  { %156 = dma.vmem_to_hbm [thread:$0]  %s149_s23, 256, %s151_s26, [#allocation5], %s271_s0, %s271_s0, %s272_s27  }
  0xb2   :  { %265 = dma.done.wait [#allocation5], 256  }
  0xb3   :  { %266 = vsyncadd [#allocation5], 4294967040 }
  0xb4   :  { %161 = vsyncpa [#allocation4], 1 }
  0xb5   :  { %162 = vsyncpa [#allocation5], 1 }

</bundles_post_ra>
